<compile_context>
chip_gen: v7x
topology: tpu7x:2x2x1
jax: 0.10.0
libtpu: 0.0.40
codegen_flags: <defaults>
</compile_context>

<pallas_src>
import functools
from typing import NamedTuple

import jax
import jax.numpy as jnp
from jax.experimental import pallas as pl
from jax.experimental.pallas import tpu as pltpu


def _round_up(x: int, m: int) -> int:
    return ((x + m - 1) // m) * m


class _Arch(NamedTuple):
    vmem_cap: int      # physical VMEM bytes per TensorCore
    n_align: int       # MXU-friendly alignment for matmul-N dims (128 or 256)
    tile_m: int        # preferred token-tile rows for large M
    num_tcs: int       # TensorCores per chip (megacore sharding)


@functools.lru_cache(maxsize=None)
def _tpu_arch() -> _Arch:
    """Best-effort TPU-generation query; falls back to conservative defaults."""
    vmem_cap = 128 << 20
    try:
        vmem_cap = int(pltpu.get_tpu_info().vmem_capacity_bytes)
    except Exception:
        pass
    kind = ""
    try:
        kind = jax.devices()[0].device_kind.lower()
    except Exception:
        pass
    is_v7 = ("v7" in kind) or ("7x" in kind) or vmem_cap <= (64 << 20)
    is_v6 = "v6" in kind
    if is_v7:
        # 64 MiB VMEM / TC, 2 TCs, 256-wide MXU -> smaller tiles, >=2 grid steps.
        return _Arch(vmem_cap=min(vmem_cap, 64 << 20), n_align=256,
                     tile_m=256, num_tcs=2)
    if is_v6:
        # 128 MiB VMEM, 256-wide MXU, 1 TC -> big 512-row tiles.
        return _Arch(vmem_cap=vmem_cap, n_align=256, tile_m=512, num_tcs=1)
    # v5e / unknown: 128-wide MXU, keep 128 alignment.
    return _Arch(vmem_cap=vmem_cap, n_align=128,
                 tile_m=512 if vmem_cap >= (96 << 20) else 256, num_tcs=1)


def _resident_spec(shape):
    """Grid-invariant block (block index 0 at every step): single-buffer it so
    the resident weights / biases don't burn 2x VMEM on useless
    double-buffering."""
    idx = lambda i: (0,) * len(shape)
    try:
        return pl.BlockSpec(shape, idx, pipeline_mode=pl.Buffered(1))
    except TypeError:  # older JAX without pipeline_mode: fall back (still correct)
        return pl.BlockSpec(shape, idx)


def _model_kernel(x_ref, w1_ref, b1_ref, w2_ref, b2_ref, z_ref, y_ref):
    """Fused converter + suffix over one token tile.

    x_ref : [TM, Dip]   input tokens (caller dtype, cast in-VMEM)
    w1_ref: [Dip, Dhp]  converter weight (transposed, compute dtype, resident)
    b1_ref: [1, Dhp]    converter bias (f32)
    w2_ref: [Dhp, Dop]  suffix weight (transposed, compute dtype, resident)
    b2_ref: [1, Dop]    suffix bias (f32)
    z_ref : [TM, Dop]   suffix(converter(x))
    y_ref : [TM, Dhp]   converter(x)
    """
    # Cast activations to the MXU compute dtype in-VMEM (x stays f32 in HBM).
    x = x_ref[...].astype(w1_ref.dtype)

    # converter: y = x @ W1 + b1   (MXU matmul, f32 accumulation + f32 bias add)
    acc1 = jnp.dot(x, w1_ref[...], preferred_element_type=jnp.float32) + b1_ref[...]

    # Round ONCE; the same value is stored as y and consumed by the suffix,
    # so the returned pair is self-consistent: z == suffix(y) exactly.
    y_c = acc1.astype(w2_ref.dtype)
    y_ref[...] = y_c.astype(y_ref.dtype)

    # suffix: z = y @ W2 + b2      (second MXU matmul)
    acc2 = jnp.dot(y_c, w2_ref[...], preferred_element_type=jnp.float32) + b2_ref[...]
    z_ref[...] = acc2.astype(z_ref.dtype)


def prepare_params(w1, b1, w2, b2, *, compute_dtype=jnp.bfloat16):
    """One-time weight layout prep (call ONCE, reuse for every forward call):
    transpose PyTorch [out, in] -> [in, out], zero-pad to lane/MXU-aligned
    shapes, cast to the MXU compute dtype.  Keeping this out of the forward
    pass avoids re-reading + re-writing both weight matrices in HBM per call.
    """
    arch = _tpu_arch()
    d_hid, d_in = w1.shape
    d_out = w2.shape[0]
    # K dim lane-aligned to 128; matmul-N dims aligned to the MXU width
    # (256 on v6e/v7x, 128 on v5e) unless they are tiny (<= 128 lanes) where
    # extra padding would just inflate output writeback.
    dip = _round_up(d_in, 128)
    dhp = _round_up(d_hid, arch.n_align if d_hid > 128 else 128)
    dop = _round_up(d_out, arch.n_align if d_out > 128 else 128)

    w1_t = jnp.pad(w1.T.astype(compute_dtype), ((0, dip - d_in), (0, dhp - d_hid)))
    w2_t = jnp.pad(w2.T.astype(compute_dtype), ((0, dhp - d_hid), (0, dop - d_out)))
    b1p = jnp.pad(b1.astype(jnp.float32).reshape(1, d_hid), ((0, 0), (0, dhp - d_hid)))
    b2p = jnp.pad(b2.astype(jnp.float32).reshape(1, d_out), ((0, 0), (0, dop - d_out)))
    return w1_t, b1p, w2_t, b2p


def model_forward(x, w1_t, b1p, w2_t, b2p, *, d_hid, d_out, out_dtype=None):
    """_Model.forward:  y = converter(x) ; return (suffix(y), y).

    x: [B, S, D_in];  weights must come from `prepare_params` (already
    transposed / padded / cast).  Matmuls run on the MXU in the prepared
    compute dtype with f32 accumulation; outputs are written in `out_dtype`
    (defaults to x.dtype; pass jnp.bfloat16 to halve output HBM traffic).
    """
    arch = _tpu_arch()
    B, S, d_in = x.shape
    dip, dhp = w1_t.shape
    dop = w2_t.shape[1]
    M = B * S
    out_dtype = jnp.dtype(x.dtype if out_dtype is None else out_dtype)
    compute_dtype = jnp.dtype(w1_t.dtype)

    xsize = jnp.dtype(x.dtype).itemsize
    csize = compute_dtype.itemsize
    osize = out_dtype.itemsize

    # Resident (single-buffered) weights + f32 biases.
    resident_bytes = (dip * dhp + dhp * dop) * csize + (dhp + dop) * 4

    def _footprint(tm_):
        return (2 * tm_ * dip * xsize                 # x tile, double-buffered
                + 2 * tm_ * (dhp + dop) * osize       # y/z tiles, double-buffered
                + resident_bytes                      # W1/W2/b1/b2, single-buffered
                + tm_ * (dhp + dop) * 4               # f32 accumulators
                + tm_ * dhp * csize)                  # rounded intermediate

    budget = int(arch.vmem_cap * 0.78)

    # ---- token-tile sizing ---------------------------------------------------
    sub = 16 if compute_dtype == jnp.bfloat16 else 8   # bf16 packs 16 rows/vreg
    if M <= 128:
        tm = _round_up(M, sub)                          # single small tile
    else:
        # Aim for >= num_tcs tiles so the 'parallel' axis keeps both v7x
        # TensorCores busy, and >= 2 tiles so DMA pipelining has something
        # to overlap.  Shrink the tile if the per-step footprint won't fit.
        min_tiles = max(2, arch.num_tcs)
        tm = min(arch.tile_m, max(128, _round_up(-(-M // min_tiles), 128)))
        while tm > 128 and _footprint(tm) > budget:
            tm = max(128, tm // 2)
    Mp = _round_up(M, tm)
    grid = (Mp // tm,)

    # TODO(synk): if the hidden sizes grow so large that the single-buffered
    # resident weights alone exceed the VMEM budget (~2.5-3K on v7x), switch
    # to a K/N-tiled accumulation grid (pl.when init/finalize) instead.
    vmem_limit = int(min(arch.vmem_cap * 0.8,
                         max(_footprint(tm) * 3 // 2, 32 << 20)))

    # ---- activation layout: flatten tokens; pad only when actually needed.
    # No dtype cast here -- the kernel casts in-VMEM, so f32 x is read from
    # HBM exactly once instead of read + write + read.
    x2 = x.reshape(M, d_in)
    if (Mp != M) or (dip != d_in):
        x2 = jnp.pad(x2, ((0, Mp - M), (0, dip - d_in)))

    flops = 2 * Mp * dip * dhp + 2 * Mp * dhp * dop
    bytes_accessed = (x2.size * xsize + w1_t.size * csize + w2_t.size * csize
                      + b1p.size * 4 + b2p.size * 4
                      + Mp * (dhp + dop) * osize)

    # TODO(synk): if profiling shows exposed input DMA at very small D, bump
    # the x BlockSpec to pipeline_mode=pl.Buffered(3).
    z2, y2 = pl.pallas_call(
        _model_kernel,
        out_shape=(
            jax.ShapeDtypeStruct((Mp, dop), out_dtype),
            jax.ShapeDtypeStruct((Mp, dhp), out_dtype),
        ),
        grid_spec=pltpu.PrefetchScalarGridSpec(
            num_scalar_prefetch=0,
            grid=grid,
            in_specs=[
                pl.BlockSpec((tm, dip), lambda i: (i, 0)),   # x tile (pipelined)
                _resident_spec((dip, dhp)),                  # W1 (grid-invariant)
                _resident_spec((1, dhp)),                    # b1
                _resident_spec((dhp, dop)),                  # W2 (grid-invariant)
                _resident_spec((1, dop)),                    # b2
            ],
            out_specs=[
                pl.BlockSpec((tm, dop), lambda i: (i, 0)),   # z tile
                pl.BlockSpec((tm, dhp), lambda i: (i, 0)),   # y tile
            ],
        ),
        compiler_params=pltpu.CompilerParams(
            dimension_semantics=("parallel",),
            vmem_limit_bytes=vmem_limit,
        ),
        cost_estimate=pl.CostEstimate(
            flops=flops, transcendentals=0, bytes_accessed=bytes_accessed),
    )(x2, w1_t, b1p, w2_t, b2p)

    z = z2[:M, :d_out].reshape(B, S, d_out)
    y = y2[:M, :d_hid].reshape(B, S, d_hid)
    return z, y


if __name__ == "__main__":
    # Small shapes consistent with the module: batch=2, seq=8, hidden=32.
    B, S, D_in, D_hid, D_out = 2, 8, 32, 32, 32

    key = jax.random.PRNGKey(0)
    kx, kw1, kb1, kw2, kb2 = jax.random.split(key, 5)

    x = jax.random.normal(kx, (B, S, D_in), dtype=jnp.float32)
    # Deterministic "parameter init" (PyTorch Linear layout: [out, in]).
    w1 = jax.random.normal(kw1, (D_hid, D_in), dtype=jnp.float32) * 0.05
    b1 = jax.random.normal(kb1, (D_hid,), dtype=jnp.float32) * 0.05
    w2 = jax.random.normal(kw2, (D_out, D_hid), dtype=jnp.float32) * 0.05
    b2 = jax.random.normal(kb2, (D_out,), dtype=jnp.float32) * 0.05

    # One-time weight prep (reused across forward calls), then jit the forward.
    params = prepare_params(w1, b1, w2, b2)
    fwd = jax.jit(functools.partial(model_forward, d_hid=D_hid, d_out=D_out))
    z, y = fwd(x, *params)
    jax.block_until_ready((z, y))

    # Plain-JAX f32 reference of _Model.forward.  The kernel feeds the MXU in
    # bf16 (f32 accumulation), so compare with a correspondingly looser
    # tolerance.
    y_ref = x @ w1.T + b1
    z_ref = y_ref @ w2.T + b2
    assert jnp.allclose(y, y_ref, atol=5e-2, rtol=5e-2), "converter mismatch"
    assert jnp.allclose(z, z_ref, atol=5e-2, rtol=5e-2), "suffix mismatch"

    print("KERNEL_OK")
</pallas_src>

<mosaic_0001>
module attributes {stable_mosaic.version = 11 : i64} {
  func.func @_model_kernel(%arg0: i32, %arg1: memref<16x128xf32, #tpu.memory_space<vmem>>, %arg2: memref<128x128xbf16, #tpu.memory_space<vmem>>, %arg3: memref<1x128xf32, #tpu.memory_space<vmem>>, %arg4: memref<128x128xbf16, #tpu.memory_space<vmem>>, %arg5: memref<1x128xf32, #tpu.memory_space<vmem>>, %arg6: memref<16x128xf32, #tpu.memory_space<vmem>>, %arg7: memref<16x128xf32, #tpu.memory_space<vmem>>) attributes {dimension_semantics = [#tpu.dimension_semantics<parallel>], iteration_bounds = array<i64: 1>, scalar_prefetch = 0 : i64, scratch_operands = 0 : i64, tpu.core_type = #tpu.core_type<tc>, window_params = [{transform_indices = @transform_0, window_bounds = array<i64: 16, 128>}, {pipeline_mode = #tpu.pipeline_mode<synchronous>, transform_indices = @transform_1, window_bounds = array<i64: 128, 128>}, {pipeline_mode = #tpu.pipeline_mode<synchronous>, transform_indices = @transform_2, window_bounds = array<i64: 1, 128>}, {pipeline_mode = #tpu.pipeline_mode<synchronous>, transform_indices = @transform_3, window_bounds = array<i64: 128, 128>}, {pipeline_mode = #tpu.pipeline_mode<synchronous>, transform_indices = @transform_4, window_bounds = array<i64: 1, 128>}, {transform_indices = @transform_5, window_bounds = array<i64: 16, 128>}, {transform_indices = @transform_6, window_bounds = array<i64: 16, 128>}]} {
    %c0 = arith.constant 0 : index
    %c0_0 = arith.constant 0 : index
    %0 = vector.load %arg1[%c0, %c0_0] : memref<16x128xf32, #tpu.memory_space<vmem>>, vector<16x128xf32>
    %1 = arith.truncf %0 : vector<16x128xf32> to vector<16x128xbf16>
    %c0_1 = arith.constant 0 : index
    %c0_2 = arith.constant 0 : index
    %2 = vector.load %arg2[%c0_1, %c0_2] : memref<128x128xbf16, #tpu.memory_space<vmem>>, vector<128x128xbf16>
    %cst = arith.constant dense<0.000000e+00> : vector<16x128xf32>
    %3 = tpu.matmul %1, %2, %cst {dimension_numbers = #tpu.dot_dimension_numbers<[1], [0], [0], [1], [0, 0, 1, 1], [], []>} : vector<16x128xbf16>, vector<128x128xbf16>, vector<16x128xf32> -> vector<16x128xf32>
    %c0_3 = arith.constant 0 : index
    %c0_4 = arith.constant 0 : index
    %4 = vector.load %arg3[%c0_3, %c0_4] : memref<1x128xf32, #tpu.memory_space<vmem>>, vector<1x128xf32>
    %5 = vector.broadcast %4 : vector<1x128xf32> to vector<16x128xf32>
    %6 = arith.addf %3, %5 : vector<16x128xf32>
    %7 = arith.truncf %6 : vector<16x128xf32> to vector<16x128xbf16>
    %8 = arith.extf %7 : vector<16x128xbf16> to vector<16x128xf32>
    %c0_5 = arith.constant 0 : index
    %c0_6 = arith.constant 0 : index
    %9 = vector.load %arg7[%c0_5, %c0_6] : memref<16x128xf32, #tpu.memory_space<vmem>>, vector<16x128xf32>
    tpu.vector_store %arg7[%c0_5, %c0_6], %8 {strides = array<i32>} : memref<16x128xf32, #tpu.memory_space<vmem>>, vector<16x128xf32>,
    %c0_7 = arith.constant 0 : index
    %c0_8 = arith.constant 0 : index
    %10 = vector.load %arg4[%c0_7, %c0_8] : memref<128x128xbf16, #tpu.memory_space<vmem>>, vector<128x128xbf16>
    %cst_9 = arith.constant dense<0.000000e+00> : vector<16x128xf32>
    %11 = tpu.matmul %7, %10, %cst_9 {dimension_numbers = #tpu.dot_dimension_numbers<[1], [0], [0], [1], [0, 0, 1, 1], [], []>} : vector<16x128xbf16>, vector<128x128xbf16>, vector<16x128xf32> -> vector<16x128xf32>
    %c0_10 = arith.constant 0 : index
    %c0_11 = arith.constant 0 : index
    %12 = vector.load %arg5[%c0_10, %c0_11] : memref<1x128xf32, #tpu.memory_space<vmem>>, vector<1x128xf32>
    %13 = vector.broadcast %12 : vector<1x128xf32> to vector<16x128xf32>
    %14 = arith.addf %11, %13 : vector<16x128xf32>
    %c0_12 = arith.constant 0 : index
    %c0_13 = arith.constant 0 : index
    %15 = vector.load %arg6[%c0_12, %c0_13] : memref<16x128xf32, #tpu.memory_space<vmem>>, vector<16x128xf32>
    tpu.vector_store %arg6[%c0_12, %c0_13], %14 {strides = array<i32>} : memref<16x128xf32, #tpu.memory_space<vmem>>, vector<16x128xf32>,
    return
  }
  func.func @transform_0(%arg0: i32) -> (i32, i32) {
    %c0_i32 = arith.constant 0 : i32
    %c0_i32_0 = arith.constant 0 : i32
    return %arg0, %c0_i32 : i32, i32
  }
  func.func @transform_1(%arg0: i32) -> (i32, i32) {
    %c0_i32 = arith.constant 0 : i32
    %c0_i32_0 = arith.constant 0 : i32
    %c0_i32_1 = arith.constant 0 : i32
    return %c0_i32, %c0_i32_0 : i32, i32
  }
  func.func @transform_2(%arg0: i32) -> (i32, i32) {
    %c0_i32 = arith.constant 0 : i32
    %c0_i32_0 = arith.constant 0 : i32
    %c0_i32_1 = arith.constant 0 : i32
    return %c0_i32, %c0_i32_0 : i32, i32
  }
  func.func @transform_3(%arg0: i32) -> (i32, i32) {
    %c0_i32 = arith.constant 0 : i32
    %c0_i32_0 = arith.constant 0 : i32
    %c0_i32_1 = arith.constant 0 : i32
    return %c0_i32, %c0_i32_0 : i32, i32
  }
  func.func @transform_4(%arg0: i32) -> (i32, i32) {
    %c0_i32 = arith.constant 0 : i32
    %c0_i32_0 = arith.constant 0 : i32
    %c0_i32_1 = arith.constant 0 : i32
    return %c0_i32, %c0_i32_0 : i32, i32
  }
  func.func @transform_5(%arg0: i32) -> (i32, i32) {
    %c0_i32 = arith.constant 0 : i32
    %c0_i32_0 = arith.constant 0 : i32
    return %arg0, %c0_i32 : i32, i32
  }
  func.func @transform_6(%arg0: i32) -> (i32, i32) {
    %c0_i32 = arith.constant 0 : i32
    %c0_i32_0 = arith.constant 0 : i32
    return %arg0, %c0_i32 : i32, i32
  }
}

</mosaic_0001>

<bundles_post_ra>
// kernel: model_forward.1
= control target key start
LH: loop header
LB: loop body
LE: loop exit
PB: predicated region body
PF: predicated region fallthrough
CT: control target
= control target key end

     0   :  { %12 = vsyncpa [#allocation3], 0  ;;  %s530_s0 = inlined_call_operand.vmem [shape: f32[16,128], index: 0, kind: input, shape index: {}]   ;;  %s531_s1 = inlined_call_operand.hbm [shape: bf16[128,128], index: 1, kind: input, shape index: {}]   ;;  %s532_s2 = inlined_call_operand.vmem [shape: f32[1,128], index: 2, kind: input, shape index: {}]   ;;  %s533_s3 = inlined_call_operand.hbm [shape: bf16[128,128], index: 3, kind: input, shape index: {}]   ;;  %s534_s4 = inlined_call_operand.vmem [shape: f32[1,128], index: 4, kind: input, shape index: {}]   ;;  %s535_s5 = inlined_call_operand.vmem [shape: f32[16,128], index: 5, kind: output, shape index: {0}]   ;;  %s536_s6 = inlined_call_operand.vmem [shape: f32[16,128], index: 6, kind: output, shape index: {1}]  }
   0x1   :  { %13 = vsyncpa [#allocation5], 0  ;;  %s441_s21 = smov [#allocation2]   ;;  %s393_s25 = scalar_lea.hbm %s531_s1, 1024 }
   0x2   :  { %s21_s22 = sshll.u32 %s441_s21, 4  ;;  %p394_p0 = scmp.ne.s32.totalorder %s531_s1, %s393_s25  ;;  %s22_s22 = int_to_ptr.vmem [resolvable:$true] %s21_s22 }
   0x3   :  { %p397_p1 = scmp.lt.u32.totalorder %s393_s25, %s531_s1 }
   0x5   :  { %p399_p2 = pnand %p397_p1, %p394_p0 }
   0x7   :  { %402 = shalt.err (!%p399_p2)
}
   0x8   :  { %s403_s30 = scalar_lea.vmem %s22_s22, 1024  ;;  %p408_p4 = scmp.lt.s32.totalorder %s22_s22, %s22_s22 }
   0x9   :  { %p404_p3 = scmp.ne.s32.totalorder %s22_s22, %s403_s30  ;;  %p409_p5 = scmp.lt.s32.totalorder %s403_s30, %s403_s30 }
   0xb   :  { %p410_p6 = por %p409_p5, %p408_p4 }
   0xd   :  { %p411_p7 = pnand %p410_p6, %p404_p3 }
   0xf   :  { %414 = shalt.err (!%p411_p7)
}
  0x10   :  { %s442_s7 = smov 64   ;;  %s443_s8 = smov 4  }
  0x11   :  { %27 = dma.hbm_to_vmem [thread:$0]  %s531_s1, 1024, %s22_s22, [#allocation3], %s442_s7, %s442_s7, %s443_s8  }
  0x12   :  { %s444_s11 = smov [#allocation4]   ;;  %s415_s15 = scalar_lea.hbm %s533_s3, 1024 }
  0x13   :  { %s35_s12 = sshll.u32 %s444_s11, 4  ;;  %p416_p8 = scmp.ne.s32.totalorder %s533_s3, %s415_s15  ;;  %s36_s12 = int_to_ptr.vmem [resolvable:$true] %s35_s12 }
  0x14   :  { %p419_p9 = scmp.lt.u32.totalorder %s415_s15, %s533_s3 }
  0x16   :  { %p421_p10 = pnand %p419_p9, %p416_p8 }
  0x18   :  { %424 = shalt.err (!%p421_p10)
}
  0x19   :  { %s425_s20 = scalar_lea.vmem %s36_s12, 1024  ;;  %p430_p12 = scmp.lt.s32.totalorder %s36_s12, %s36_s12 }
  0x1a   :  { %p426_p11 = scmp.ne.s32.totalorder %s36_s12, %s425_s20  ;;  %p431_p13 = scmp.lt.s32.totalorder %s425_s20, %s425_s20 }
  0x1c   :  { %p432_p0 = por %p431_p13, %p430_p12 }
  0x1e   :  { %p433_p1 = pnand %p432_p0, %p426_p11 }
  0x20   :  { %436 = shalt.err (!%p433_p1)
}
  0x21   :  { %41 = dma.hbm_to_vmem [thread:$0]  %s533_s3, 1024, %s36_s12, [#allocation5], %s442_s7, %s442_s7, %s443_s8  }
  0x22   :  { %437 = dma.done.wait [#allocation3], 1024  }
  0x23   :  { %438 = vsyncadd [#allocation3], 4294966272 }
  0x24   :  { %439 = dma.done.wait [#allocation5], 1024  }
  0x25   :  { %440 = vsyncadd [#allocation5], 4294966272  ;;  %v445_v0 = vmov 0.0   ;;  %vm446_vm0 = vmmov 0   ;;  %v377_v1 = vld [vmem:[#allocation2] sm:$0xff]   ;;  %v378_v2 = vld [vmem:[#allocation2 + $0x8] sm:$0xff]  }
  0x26   :  { %331 = vmatprep.subr.bf16.mxu0 %v445_v0  ;;  %347 = vmatprep.mubr.msk.bf16.mxu0 %vm446_vm0, %v445_v0  ;;  %v379_v3 = vld [vmem:[#allocation2 + $0x10] sm:$0xff]   ;;  %v385_v4 = vld [vmem:[#allocation4] sm:$0xff]   ;;  %v380_v5 = vld [vmem:[#allocation2 + $0x18] sm:$0xff]  }
  0x27   :  { %351 = vmatprep.subr.bf16.mxu1 %v445_v0  ;;  %367 = vmatprep.mubr.msk.bf16.mxu1 %vm446_vm0, %v445_v0  ;;  %v386_v6 = vld [vmem:[#allocation4 + $0x8] sm:$0xff]   ;;  %v381_v7 = vld [vmem:[#allocation2 + $0x20] sm:$0xff]   ;;  %v387_v8 = vld [vmem:[#allocation4 + $0x10] sm:$0xff]  }
  0x28   :  { %332 = vmatpush3.bf16.msra.mxu0 %v377_v1  ;;  %352 = vmatpush3.bf16.msra.mxu1 %v385_v4  ;;  %v382_v9 = vld [vmem:[#allocation2 + $0x28] sm:$0xff]   ;;  %v388_v10 = vld [vmem:[#allocation4 + $0x18] sm:$0xff]   ;;  %v383_v11 = vld [vmem:[#allocation2 + $0x30] sm:$0xff]  }
  0x29   :  { %333 = vmatprep.subr.bf16.mxu0 %v445_v0  ;;  %353 = vmatprep.subr.bf16.mxu1 %v445_v0  ;;  %v389_v12 = vld [vmem:[#allocation4 + $0x20] sm:$0xff]   ;;  %v384_v13 = vld [vmem:[#allocation2 + $0x38] sm:$0xff]   ;;  %v52_v15 = vld [vmem:[%s530_s0 + $0x8] sm:$0xff] }
  0x2a   :  { %v51_v14 = vld [vmem:[%s530_s0] sm:$0xff]  ;;  %v390_v16 = vld [vmem:[#allocation4 + $0x28] sm:$0xff]   ;;  %v391_v18 = vld [vmem:[#allocation4 + $0x30] sm:$0xff]  }
  0x2b   :  { %v53_v17 = vpack.c.bf16 %v52_v15, %v51_v14  ;;  %v392_v19 = vld [vmem:[#allocation4 + $0x38] sm:$0xff]   ;;  %v295_v20 = vld [vmem:[%s532_s2] ss:$0 sm:$0xff] }
  0x2c   :  { %334 = vmatpush3.bf16.msra.mxu0 %v378_v2  ;;  %354 = vmatpush3.bf16.msra.mxu1 %v386_v6  ;;  %v304_v30 = vld [vmem:[%s534_s4] ss:$0 sm:$0xff] }
  0x2d   :  { %335 = vmatprep.subr.bf16.mxu0 %v445_v0  ;;  %355 = vmatprep.subr.bf16.mxu1 %v445_v0 }
  0x30   :  { %336 = vmatpush3.bf16.msra.mxu0 %v379_v3  ;;  %356 = vmatpush3.bf16.msra.mxu1 %v387_v8 }
  0x31   :  { %337 = vmatprep.subr.bf16.mxu0 %v445_v0  ;;  %357 = vmatprep.subr.bf16.mxu1 %v445_v0 }
  0x34   :  { %338 = vmatpush3.bf16.msra.mxu0 %v380_v5  ;;  %358 = vmatpush3.bf16.msra.mxu1 %v388_v10 }
  0x35   :  { %339 = vmatprep.subr.bf16.mxu0 %v445_v0  ;;  %359 = vmatprep.subr.bf16.mxu1 %v445_v0 }
  0x38   :  { %340 = vmatpush3.bf16.msra.mxu0 %v381_v7  ;;  %360 = vmatpush3.bf16.msra.mxu1 %v389_v12 }
  0x39   :  { %341 = vmatprep.subr.bf16.mxu0 %v445_v0  ;;  %361 = vmatprep.subr.bf16.mxu1 %v445_v0 }
  0x3c   :  { %342 = vmatpush3.bf16.msra.mxu0 %v382_v9  ;;  %362 = vmatpush3.bf16.msra.mxu1 %v390_v16 }
  0x3d   :  { %343 = vmatprep.subr.bf16.mxu0 %v445_v0  ;;  %363 = vmatprep.subr.bf16.mxu1 %v445_v0 }
  0x40   :  { %344 = vmatpush3.bf16.msra.mxu0 %v383_v11  ;;  %364 = vmatpush3.bf16.msra.mxu1 %v391_v18 }
  0x41   :  { %345 = vmatprep.subr.bf16.mxu0 %v445_v0  ;;  %365 = vmatprep.subr.bf16.mxu1 %v445_v0 }
  0x44   :  { %346 = vmatpush3.bf16.msra.mxu0 %v384_v13  ;;  %366 = vmatpush3.bf16.msra.mxu1 %v392_v19 }
  0x47   :  { %348 = vmatmul.mubr.bf16.vlgmr.msra.gmra.mrb[0].mxu0 %v53_v17 }
 0x11a   :  { %v159_v21 = vpop.f32.mrb[0].mxu0 }
 0x11b   :  { %v349_v22 = vpop.f32.mrb[1].mxu0  ;;  %v160_v24 = vadd.f32 %v295_v20, %v159_v21 }
 0x11c   :  { %v162_v23 = vpop.f32.mrb[2].mxu0 }
 0x11d   :  { %v163_v25 = vadd.f32 %v295_v20, %v162_v23  ;;  %v350_v26 = vpop.f32.mrb[3].mxu0 }
 0x11f   :  { %v166_v27 = vpack.c.bf16 %v163_v25, %v160_v24 }
 0x121   :  { %v167_v28 = vunpack.c.l.bf16 %v166_v27  ;;  %v168_v29 = vunpack.c.h.bf16 %v166_v27  ;;  %368 = vmatmul.mubr.bf16.vlgmr.msra.gmra.mrb[0].mxu1 %v166_v27 }
 0x123   :  { %169 = vst [vmem:[%s536_s6] sm:$0xff] %v167_v28  ;;  %170 = vst [vmem:[%s536_s6 + $0x8] sm:$0xff] %v168_v29 }
 0x1f4   :  { %v276_v31 = vpop.f32.mrb[0].mxu1 }
 0x1f5   :  { %v277_v32 = vadd.f32 %v304_v30, %v276_v31  ;;  %v369_v33 = vpop.f32.mrb[1].mxu1 }
 0x1f6   :  { %v279_v34 = vpop.f32.mrb[2].mxu1 }
 0x1f7   :  { %283 = vst [vmem:[%s535_s5] sm:$0xff] %v277_v32  ;;  %v280_v35 = vadd.f32 %v304_v30, %v279_v34  ;;  %v370_v36 = vpop.f32.mrb[3].mxu1 }
 0x1f9   :  { %284 = vst [vmem:[%s535_s5 + $0x8] sm:$0xff] %v280_v35 }
 0x1fa   :  { %293 = vsyncpa [#allocation3], 1 }
 0x1fb   :  { %294 = vsyncpa [#allocation5], 1 }

</bundles_post_ra>
